<compile_context>
chip_gen: v6e
topology: v6e:2x2x1
jax: 0.10.0
libtpu: 0.0.40
codegen_flags: <defaults>
</compile_context>

<pallas_src>
import functools

import jax
import jax.numpy as jnp
from jax.experimental import pallas as pl
from jax.experimental.pallas import tpu as pltpu


def _round_up(x, m):
    return ((x + m - 1) // m) * m


def _pad2d(x, rows, cols):
    r, c = x.shape
    return jnp.pad(x, ((0, rows - r), (0, cols - c)))


def gcn_fused_kernel(a_ref, x_ref, w1_ref, b1_ref, mask_ref, w2_ref, b2_ref, o_ref, *,
                     agg_first_l1: bool, agg_first_l2: bool, matmul_dtype):
    """Fused 2-layer GCN forward; h1 stays on-chip, A_norm is read once."""
    f32 = jnp.float32
    a = a_ref[...].astype(matmul_dtype)
    x = x_ref[...].astype(matmul_dtype)

    # ---- layer 1: h1 = relu(A_norm . X . W1 + b1) ----
    w1 = w1_ref[...].astype(matmul_dtype)
    if agg_first_l1:          # out_feats > in_feats: contract N x N on the narrow side
        ax = jnp.dot(a, x, preferred_element_type=f32)
        h1 = jnp.dot(ax.astype(matmul_dtype), w1, preferred_element_type=f32)
    else:                     # in_feats >= out_feats: feature transform first
        xw = jnp.dot(x, w1, preferred_element_type=f32)
        h1 = jnp.dot(a, xw.astype(matmul_dtype), preferred_element_type=f32)
    h1 = jnp.maximum(h1 + b1_ref[...], 0.0)

    # ---- dropout(p): mask_ref already holds 0 or 1/(1-p), a single VPU multiply ----
    h1 = h1 * mask_ref[...]

    # ---- layer 2: out = A_norm . h1 . W2 + b2 ----
    h1m = h1.astype(matmul_dtype)
    w2 = w2_ref[...].astype(matmul_dtype)
    if agg_first_l2:
        ah = jnp.dot(a, h1m, preferred_element_type=f32)
        out = jnp.dot(ah.astype(matmul_dtype), w2, preferred_element_type=f32)
    else:
        hw = jnp.dot(h1m, w2, preferred_element_type=f32)
        out = jnp.dot(a, hw.astype(matmul_dtype), preferred_element_type=f32)

    o_ref[...] = (out + b2_ref[...]).astype(o_ref.dtype)


def _layer_flops(n, f_in, f_out, agg_first):
    if agg_first:
        return 2 * n * n * f_in + 2 * n * f_in * f_out
    return 2 * n * f_in * f_out + 2 * n * n * f_out


def gcn_forward(a_norm, features, params, dropout_key, *,
                dropout_p: float = 0.5, training: bool = True,
                matmul_dtype=jnp.float32):
    """GCN.forward: layer0 (relu, no dropout) -> dropout -> layer1 (no activation)."""
    w1, b1, w2, b2 = params
    n, in_size = features.shape
    hid_size = w1.shape[1]
    out_size = w2.shape[1]

    # Lane-dense padding: features on the 128-lane axis, nodes on the 8-sublane axis.
    n_pad = _round_up(n, 8)
    in_pad = _round_up(in_size, 128)
    hid_pad = _round_up(hid_size, 128)
    out_pad = _round_up(out_size, 128)

    a_p = _pad2d(a_norm.astype(jnp.float32), n_pad, n_pad)
    x_p = _pad2d(features.astype(jnp.float32), n_pad, in_pad)
    w1_p = _pad2d(w1.astype(jnp.float32), in_pad, hid_pad)
    b1_p = _pad2d(b1.reshape(1, -1).astype(jnp.float32), 1, hid_pad)
    w2_p = _pad2d(w2.astype(jnp.float32), hid_pad, out_pad)
    b2_p = _pad2d(b2.reshape(1, -1).astype(jnp.float32), 1, out_pad)

    # Inverted-dropout mask, pre-scaled to {0, 1/(1-p)}.
    # TODO(synk): PyTorch's dropout RNG stream cannot be reproduced bit-exactly.
    if training and dropout_p > 0.0:
        keep = jax.random.bernoulli(dropout_key, 1.0 - dropout_p, (n_pad, hid_pad))
        mask = keep.astype(jnp.float32) * (1.0 / (1.0 - dropout_p))
    else:
        mask = jnp.ones((n_pad, hid_pad), jnp.float32)

    # GraphConv association choice, based on the original (unpadded) widths.
    agg_first_l1 = hid_size > in_size
    agg_first_l2 = out_size > hid_size

    kernel = functools.partial(
        gcn_fused_kernel,
        agg_first_l1=agg_first_l1,
        agg_first_l2=agg_first_l2,
        matmul_dtype=matmul_dtype,
    )

    bytes_accessed = int(a_p.nbytes + x_p.nbytes + w1_p.nbytes + b1_p.nbytes +
                         mask.nbytes + w2_p.nbytes + b2_p.nbytes + n_pad * out_pad * 4)
    flops = int(_layer_flops(n_pad, in_pad, hid_pad, agg_first_l1) +
                _layer_flops(n_pad, hid_pad, out_pad, agg_first_l2))
    cost = pl.CostEstimate(flops=flops, transcendentals=0, bytes_accessed=bytes_accessed)

    # Scoped-VMEM hint with headroom; clamps to the 32 MiB default at these toy
    # shapes and stays well under v7x's 64 MiB physical VMEM.
    vmem_limit = int(min(max(3 * bytes_accessed, 32 * 1024 * 1024), 48 * 1024 * 1024))

    vmem = pltpu.MemorySpace.VMEM
    out_p = pl.pallas_call(
        kernel,
        out_shape=jax.ShapeDtypeStruct((n_pad, out_pad), jnp.float32),
        in_specs=[
            pl.BlockSpec(memory_space=vmem),   # A_norm
            pl.BlockSpec(memory_space=vmem),   # X
            pl.BlockSpec(memory_space=vmem),   # W1
            pl.BlockSpec(memory_space=vmem),   # b1
            pl.BlockSpec(memory_space=vmem),   # dropout mask
            pl.BlockSpec(memory_space=vmem),   # W2
            pl.BlockSpec(memory_space=vmem),   # b2
        ],
        out_specs=pl.BlockSpec(memory_space=vmem),
        compiler_params=pltpu.CompilerParams(vmem_limit_bytes=vmem_limit),
        cost_estimate=cost,
    )(a_p, x_p, w1_p, b1_p, mask, w2_p, b2_p)

    return out_p[:n, :out_size]


def make_normalized_adjacency(adj):
    """Symmetric normalization D^{-1/2} A D^{-1/2} (DGL norm='both')."""
    deg = adj.sum(axis=1)
    dinv = jnp.where(deg > 0, deg ** -0.5, 0.0)
    return dinv[:, None] * adj * dinv[None, :]


if __name__ == "__main__":
    N, IN_SIZE, HID_SIZE, OUT_SIZE = 8, 16, 32, 8

    key = jax.random.PRNGKey(0)
    k_adj, k_feat, k_w1, k_w2, k_drop = jax.random.split(key, 5)

    # Small deterministic undirected graph with self-loops (dense adjacency).
    adj = jax.random.bernoulli(k_adj, 0.3, (N, N))
    adj = jnp.logical_or(adj, adj.T)
    adj = jnp.logical_or(adj, jnp.eye(N, dtype=bool)).astype(jnp.float32)
    a_norm = make_normalized_adjacency(adj)

    features = jax.random.normal(k_feat, (N, IN_SIZE), dtype=jnp.float32)

    # Deterministic parameter init (GraphConv: weight xavier-like, bias zeros).
    w1 = jax.random.normal(k_w1, (IN_SIZE, HID_SIZE), dtype=jnp.float32) * (1.0 / IN_SIZE ** 0.5)
    b1 = jnp.zeros((1, HID_SIZE), dtype=jnp.float32)
    w2 = jax.random.normal(k_w2, (HID_SIZE, OUT_SIZE), dtype=jnp.float32) * (1.0 / HID_SIZE ** 0.5)
    b2 = jnp.zeros((1, OUT_SIZE), dtype=jnp.float32)

    out = gcn_forward(a_norm, features, (w1, b1, w2, b2), dropout_key=k_drop)
    out = jax.block_until_ready(out)
    assert out.shape == (N, OUT_SIZE)
    assert bool(jnp.all(jnp.isfinite(out)))

    print("KERNEL_OK")
</pallas_src>

<mosaic_0001>
module attributes {stable_mosaic.version = 11 : i64} {
  func.func @gcn_fused_kernel(%arg0: memref<8x8xf32, #tpu.memory_space<vmem>>, %arg1: memref<8x128xf32, #tpu.memory_space<vmem>>, %arg2: memref<128x128xf32, #tpu.memory_space<vmem>>, %arg3: memref<1x128xf32, #tpu.memory_space<vmem>>, %arg4: memref<8x128xf32, #tpu.memory_space<vmem>>, %arg5: memref<128x128xf32, #tpu.memory_space<vmem>>, %arg6: memref<1x128xf32, #tpu.memory_space<vmem>>, %arg7: memref<8x128xf32, #tpu.memory_space<vmem>>) attributes {dimension_semantics = [], scalar_prefetch = 0 : i64, scratch_operands = 0 : i64, tpu.core_type = #tpu.core_type<tc>} {
    %c0 = arith.constant 0 : index
    %c0_0 = arith.constant 0 : index
    %0 = vector.load %arg0[%c0, %c0_0] : memref<8x8xf32, #tpu.memory_space<vmem>>, vector<8x8xf32>
    %c0_1 = arith.constant 0 : index
    %c0_2 = arith.constant 0 : index
    %1 = vector.load %arg1[%c0_1, %c0_2] : memref<8x128xf32, #tpu.memory_space<vmem>>, vector<8x128xf32>
    %c0_3 = arith.constant 0 : index
    %c0_4 = arith.constant 0 : index
    %2 = vector.load %arg2[%c0_3, %c0_4] : memref<128x128xf32, #tpu.memory_space<vmem>>, vector<128x128xf32>
    %cst = arith.constant dense<0.000000e+00> : vector<8x128xf32>
    %3 = tpu.matmul %0, %1, %cst {dimension_numbers = #tpu.dot_dimension_numbers<[1], [0], [0], [1], [0, 0, 1, 1], [], []>} : vector<8x8xf32>, vector<8x128xf32>, vector<8x128xf32> -> vector<8x128xf32>
    %cst_5 = arith.constant dense<0.000000e+00> : vector<8x128xf32>
    %4 = tpu.matmul %3, %2, %cst_5 {dimension_numbers = #tpu.dot_dimension_numbers<[1], [0], [0], [1], [0, 0, 1, 1], [], []>} : vector<8x128xf32>, vector<128x128xf32>, vector<8x128xf32> -> vector<8x128xf32>
    %c0_6 = arith.constant 0 : index
    %c0_7 = arith.constant 0 : index
    %5 = vector.load %arg3[%c0_6, %c0_7] : memref<1x128xf32, #tpu.memory_space<vmem>>, vector<1x128xf32>
    %6 = vector.broadcast %5 : vector<1x128xf32> to vector<8x128xf32>
    %7 = arith.addf %4, %6 : vector<8x128xf32>
    %cst_8 = arith.constant 0.000000e+00 : f32
    %8 = vector.broadcast %cst_8 : f32 to vector<8x128xf32>
    %9 = arith.maximumf %7, %8 : vector<8x128xf32>
    %c0_9 = arith.constant 0 : index
    %c0_10 = arith.constant 0 : index
    %10 = vector.load %arg4[%c0_9, %c0_10] : memref<8x128xf32, #tpu.memory_space<vmem>>, vector<8x128xf32>
    %11 = arith.mulf %9, %10 : vector<8x128xf32>
    %c0_11 = arith.constant 0 : index
    %c0_12 = arith.constant 0 : index
    %12 = vector.load %arg5[%c0_11, %c0_12] : memref<128x128xf32, #tpu.memory_space<vmem>>, vector<128x128xf32>
    %cst_13 = arith.constant dense<0.000000e+00> : vector<8x128xf32>
    %13 = tpu.matmul %11, %12, %cst_13 {dimension_numbers = #tpu.dot_dimension_numbers<[1], [0], [0], [1], [0, 0, 1, 1], [], []>} : vector<8x128xf32>, vector<128x128xf32>, vector<8x128xf32> -> vector<8x128xf32>
    %cst_14 = arith.constant dense<0.000000e+00> : vector<8x128xf32>
    %14 = tpu.matmul %0, %13, %cst_14 {dimension_numbers = #tpu.dot_dimension_numbers<[1], [0], [0], [1], [0, 0, 1, 1], [], []>} : vector<8x8xf32>, vector<8x128xf32>, vector<8x128xf32> -> vector<8x128xf32>
    %c0_15 = arith.constant 0 : index
    %c0_16 = arith.constant 0 : index
    %15 = vector.load %arg6[%c0_15, %c0_16] : memref<1x128xf32, #tpu.memory_space<vmem>>, vector<1x128xf32>
    %16 = vector.broadcast %15 : vector<1x128xf32> to vector<8x128xf32>
    %17 = arith.addf %14, %16 : vector<8x128xf32>
    %c0_17 = arith.constant 0 : index
    %c0_18 = arith.constant 0 : index
    %18 = vector.load %arg7[%c0_17, %c0_18] : memref<8x128xf32, #tpu.memory_space<vmem>>, vector<8x128xf32>
    tpu.vector_store %arg7[%c0_17, %c0_18], %17 {strides = array<i32>} : memref<8x128xf32, #tpu.memory_space<vmem>>, vector<8x128xf32>,
    return
  }
}

</mosaic_0001>

<bundles_post_ra>
// kernel: tpu_custom_call.1
= control target key start
LH: loop header
LB: loop body
LE: loop exit
PB: predicated region body
PF: predicated region fallthrough
CT: control target
= control target key end

     0   :  { %12 = vsyncpa [#allocation3], 0  ;;  %s824_s0 = inlined_call_operand.hbm [shape: f32[8,8], index: 0, kind: input, shape index: {}]   ;;  %s825_s1 = inlined_call_operand.hbm [shape: f32[8,128], index: 1, kind: input, shape index: {}]   ;;  %s826_s2 = inlined_call_operand.hbm [shape: f32[128,128], index: 2, kind: input, shape index: {}]   ;;  %s827_s3 = inlined_call_operand.vmem [shape: f32[1,128], index: 3, kind: input, shape index: {}]   ;;  %s828_s4 = inlined_call_operand.hbm [shape: f32[8,128], index: 4, kind: input, shape index: {}]   ;;  %s829_s5 = inlined_call_operand.hbm [shape: f32[128,128], index: 5, kind: input, shape index: {}]   ;;  %s830_s6 = inlined_call_operand.vmem [shape: f32[1,128], index: 6, kind: input, shape index: {}]   ;;  %s831_s7 = inlined_call_operand.hbm [shape: f32[8,128], index: 7, kind: output, shape index: {}]  }
   0x1   :  { %13 = vsyncpa [#allocation6], 0 }
   0x2   :  { %14 = vsyncpa [#allocation9], 0 }
   0x3   :  { %15 = vsyncpa [#allocation4], 0  ;;  %s702_s24 = smov [#allocation5]   ;;  %s703_s26 = smov [#allocation8]  }
   0x4   :  { %s32_s25 = sshll.u32 %s702_s24, 4  ;;  %s56_s27 = sshll.u32 %s703_s26, 4  ;;  %s33_s25 = int_to_ptr.vmem [resolvable:$true] %s32_s25  ;;  %s57_s27 = int_to_ptr.vmem [resolvable:$true] %s56_s27 }
   0x5   :  { %s582_s28 = scalar_lea.vmem %s33_s25, 128  ;;  %p587_p1 = scmp.lt.s32.totalorder %s33_s25, %s33_s25 }
   0x6   :  { %p583_p0 = scmp.ne.s32.totalorder %s33_s25, %s582_s28  ;;  %p588_p2 = scmp.lt.s32.totalorder %s582_s28, %s582_s28 }
   0x8   :  { %p589_p3 = por %p588_p2, %p587_p1 }
   0xa   :  { %p590_p4 = pnand %p589_p3, %p583_p0 }
   0xc   :  { %593 = shalt.err (!%p590_p4)
}
   0xd   :  { %35 = dma.hbm_to_vmem [thread:$0]  %s825_s1, 128, %s33_s25, [#allocation6]  }
   0xe   :  { %s602_s8 = scalar_lea.vmem %s57_s27, 128  ;;  %p607_p6 = scmp.lt.s32.totalorder %s57_s27, %s57_s27 }
   0xf   :  { %p603_p5 = scmp.ne.s32.totalorder %s57_s27, %s602_s8  ;;  %p608_p7 = scmp.lt.s32.totalorder %s602_s8, %s602_s8 }
  0x11   :  { %p609_p8 = por %p608_p7, %p607_p6 }
  0x13   :  { %p610_p9 = pnand %p609_p8, %p603_p5 }
  0x15   :  { %613 = shalt.err (!%p610_p9)
}
  0x16   :  { %59 = dma.hbm_to_vmem [thread:$0]  %s828_s4, 128, %s57_s27, [#allocation9]  }
  0x17   :  { %s704_s11 = smov [#allocation2]   ;;  %s705_s13 = smov [#allocation7]  }
  0x18   :  { %s22_s12 = sshll.u32 %s704_s11, 4  ;;  %s41_s14 = sshll.u32 %s705_s13, 4  ;;  %s23_s12 = int_to_ptr.vmem [resolvable:$true] %s22_s12  ;;  %s42_s14 = int_to_ptr.vmem [resolvable:$true] %s41_s14 }
  0x19   :  { %s622_s15 = scalar_lea.vmem %s23_s12, 128  ;;  %p627_p11 = scmp.lt.s32.totalorder %s23_s12, %s23_s12 }
  0x1a   :  { %p623_p10 = scmp.ne.s32.totalorder %s23_s12, %s622_s15  ;;  %p628_p12 = scmp.lt.s32.totalorder %s622_s15, %s622_s15 }
  0x1c   :  { %p629_p13 = por %p628_p12, %p627_p11 }
  0x1e   :  { %p630_p0 = pnand %p629_p13, %p623_p10 }
  0x20   :  { %633 = shalt.err (!%p630_p0)
}
  0x21   :  { %25 = dma.hbm_to_vmem [thread:$0]  %s824_s0, 128, %s23_s12, [#allocation3]  }
  0x22   :  { %s642_s17 = scalar_lea.vmem %s42_s14, 2048  ;;  %p647_p2 = scmp.lt.s32.totalorder %s42_s14, %s42_s14 }
  0x23   :  { %p643_p1 = scmp.ne.s32.totalorder %s42_s14, %s642_s17  ;;  %p648_p3 = scmp.lt.s32.totalorder %s642_s17, %s642_s17 }
  0x25   :  { %p649_p4 = por %p648_p3, %p647_p2 }
  0x27   :  { %p650_p5 = pnand %p649_p4, %p643_p1 }
  0x29   :  { %653 = shalt.err (!%p650_p5)
}
  0x2a   :  { %s706_s4 = smov 128   ;;  %s707_s18 = smov 8  }
  0x2b   :  { %47 = dma.hbm_to_vmem [thread:$0]  %s826_s2, 2048, %s42_s14, [#allocation6], %s706_s4, %s706_s4, %s707_s18  }
  0x2c   :  { %s708_s21 = smov [#allocation10]  }
  0x2d   :  { %s65_s22 = sshll.u32 %s708_s21, 4  ;;  %s66_s22 = int_to_ptr.vmem [resolvable:$true] %s65_s22 }
  0x2e   :  { %s662_s23 = scalar_lea.vmem %s66_s22, 2048  ;;  %p667_p7 = scmp.lt.s32.totalorder %s66_s22, %s66_s22 }
  0x2f   :  { %p663_p6 = scmp.ne.s32.totalorder %s66_s22, %s662_s23  ;;  %p668_p8 = scmp.lt.s32.totalorder %s662_s23, %s662_s23 }
  0x31   :  { %p669_p9 = por %p668_p8, %p667_p7 }
  0x33   :  { %p670_p10 = pnand %p669_p9, %p663_p6 }
  0x35   :  { %673 = shalt.err (!%p670_p10)
}
  0x36   :  { %71 = dma.hbm_to_vmem [thread:$0]  %s829_s5, 2048, %s66_s22, [#allocation9], %s706_s4, %s706_s4, %s707_s18  }
  0x37   :  { %694 = dma.done.wait [#allocation3], 128  }
  0x38   :  { %695 = vsyncadd [#allocation3], 4294967168 }
  0x39   :  { %696 = dma.done.wait [#allocation6], 2176  }
  0x3a   :  { %697 = vsyncadd [#allocation6], 4294965120 }
  0x3b   :  { %698 = dma.done.wait [#allocation9], 2176  }
  0x3c   :  { %699 = vsyncadd [#allocation9], 4294965120  ;;  %v709_v0 = vmov 0.0   ;;  %vm710_vm0 = vmmov 0   ;;  %vm107_vm1 = vcmask 64512   ;;  %v90_v1 = vld [vmem:[#allocation5] sm:$0xff] }
  0x3d   :  { %484 = vmatprep.subr.mxu0 %v709_v0  ;;  %486 = vmatprep.mubr.msk.f32.mxu0 %vm710_vm0, %v709_v0  ;;  %v773_v2 = vld [vmem:[#allocation2] sm:$0xff]  ;;  %v106_v3 = vld [vmem:[#allocation7 + $0x78] sm:$0xff]  ;;  %v104_v5 = vld [vmem:[#allocation7 + $0x68] sm:$0xff]  ;;  %s711_s27 = smov [#allocation11]  }
  0x3e   :  { %489 = vmatprep.subr.mxu1 %v709_v0  ;;  %521 = vmatprep.mubr.msk.f32.mxu1 %vm710_vm0, %v709_v0  ;;  %v105_v4 = vld [vmem:[#allocation7 + $0x70] sm:$0xff]  ;;  %v103_v6 = vld [vmem:[#allocation7 + $0x60] sm:$0xff]  ;;  %v102_v7 = vld [vmem:[#allocation7 + $0x58] sm:$0xff]  ;;  %s431_s28 = sshll.u32 %s711_s27, 4  ;;  %s432_s28 = int_to_ptr.vmem [resolvable:$true] %s431_s28 }
  0x3f   :  { %485 = vmatpush3.msra.mxu0 %v90_v1  ;;  %490 = vmatpush3.msra.mxu1 %v106_v3  ;;  %v101_v8 = vld [vmem:[#allocation7 + $0x50] sm:$0xff]  ;;  %v100_v9 = vld [vmem:[#allocation7 + $0x48] sm:$0xff]  ;;  %v99_v10 = vld [vmem:[#allocation7 + $0x40] sm:$0xff]  ;;  %p679_p12 = scmp.lt.s32.totalorder %s432_s28, %s432_s28 }
  0x40   :  { %487 = vmatmul.mubr.msk.f32.vlgmr.msra.gmra.mxu0 %vm107_vm1, %v773_v2  ;;  %491 = vmatprep.subr.mxu1 %v709_v0  ;;  %v98_v11 = vld [vmem:[#allocation7 + $0x38] sm:$0xff]  ;;  %v97_v12 = vld [vmem:[#allocation7 + $0x30] sm:$0xff]  ;;  %v96_v13 = vld [vmem:[#allocation7 + $0x28] sm:$0xff] }
  0x41   :  { %492 = vmatpush3.msra.mxu1 %v105_v4  ;;  %524 = vmatprep.subr.mxu0 %v709_v0  ;;  %v95_v14 = vld [vmem:[#allocation7 + $0x20] sm:$0xff]  ;;  %v94_v15 = vld [vmem:[#allocation7 + $0x18] sm:$0xff]  ;;  %v93_v16 = vld [vmem:[#allocation7 + $0x10] sm:$0xff] }
  0x42   :  { %493 = vmatprep.subr.mxu1 %v709_v0  ;;  %556 = vmatprep.mubr.msk.f32.mxu0 %vm710_vm0, %v709_v0  ;;  %v92_v17 = vld [vmem:[#allocation7 + $0x8] sm:$0xff]  ;;  %v91_v18 = vld [vmem:[#allocation7] sm:$0xff]  ;;  %v275_v20 = vld [vmem:[#allocation10 + $0x70] sm:$0xff] }
  0x43   :  { %494 = vmatpush3.msra.mxu1 %v104_v5  ;;  %v276_v19 = vld [vmem:[#allocation10 + $0x78] sm:$0xff]  ;;  %v274_v21 = vld [vmem:[#allocation10 + $0x68] sm:$0xff]  ;;  %v273_v22 = vld [vmem:[#allocation10 + $0x60] sm:$0xff] }
  0x44   :  { %495 = vmatprep.subr.mxu1 %v709_v0  ;;  %525 = vmatpush3.msra.mxu0 %v276_v19  ;;  %v272_v23 = vld [vmem:[#allocation10 + $0x58] sm:$0xff]  ;;  %v271_v24 = vld [vmem:[#allocation10 + $0x50] sm:$0xff]  ;;  %v270_v25 = vld [vmem:[#allocation10 + $0x48] sm:$0xff] }
  0x45   :  { %496 = vmatpush3.msra.mxu1 %v103_v6  ;;  %526 = vmatprep.subr.mxu0 %v709_v0  ;;  %v269_v26 = vld [vmem:[#allocation10 + $0x40] sm:$0xff]  ;;  %v268_v27 = vld [vmem:[#allocation10 + $0x38] sm:$0xff]  ;;  %v267_v28 = vld [vmem:[#allocation10 + $0x30] sm:$0xff] }
  0x46   :  { %497 = vmatprep.subr.mxu1 %v709_v0  ;;  %527 = vmatpush3.msra.mxu0 %v275_v20  ;;  %v266_v29 = vld [vmem:[#allocation10 + $0x28] sm:$0xff]  ;;  %v265_v30 = vld [vmem:[#allocation10 + $0x20] sm:$0xff]  ;;  %v264_v33 = vld [vmem:[#allocation10 + $0x18] sm:$0xff] }
  0x47   :  { %498 = vmatpush3.msra.mxu1 %v102_v7  ;;  %528 = vmatprep.subr.mxu0 %v709_v0  ;;  %v263_v34 = vld [vmem:[#allocation10 + $0x10] sm:$0xff]  ;;  %v262_v35 = vld [vmem:[#allocation10 + $0x8] sm:$0xff]  ;;  %v261_v36 = vld [vmem:[#allocation10] sm:$0xff] }
  0x48   :  { %499 = vmatprep.subr.mxu1 %v709_v0  ;;  %529 = vmatpush3.msra.mxu0 %v274_v21  ;;  %v443_v37 = vld [vmem:[%s827_s3] ss:$0 sm:$0xff]  ;;  %v259_v40 = vld [vmem:[#allocation8] sm:$0xff]  ;;  %s674_s3 = scalar_lea.vmem %s432_s28, 128 }
  0x49   :  { %500 = vmatpush3.msra.mxu1 %v101_v8  ;;  %530 = vmatprep.subr.mxu0 %v709_v0  ;;  %v444_v46 = vld [vmem:[%s830_s6] ss:$0 sm:$0xff]  ;;  %p675_p11 = scmp.ne.s32.totalorder %s432_s28, %s674_s3  ;;  %p680_p13 = scmp.lt.s32.totalorder %s674_s3, %s674_s3 }
  0x4a   :  { %501 = vmatprep.subr.mxu1 %v709_v0  ;;  %531 = vmatpush3.msra.mxu0 %v273_v22 }
  0x4b   :  { %502 = vmatpush3.msra.mxu1 %v100_v9  ;;  %532 = vmatprep.subr.mxu0 %v709_v0  ;;  %p681_p0 = por %p680_p13, %p679_p12 }
  0x4c   :  { %503 = vmatprep.subr.mxu1 %v709_v0  ;;  %533 = vmatpush3.msra.mxu0 %v272_v23 }
  0x4d   :  { %504 = vmatpush3.msra.mxu1 %v99_v10  ;;  %534 = vmatprep.subr.mxu0 %v709_v0  ;;  %p682_p1 = pnand %p681_p0, %p675_p11 }
  0x4e   :  { %505 = vmatprep.subr.mxu1 %v709_v0  ;;  %535 = vmatpush3.msra.mxu0 %v271_v24 }
  0x4f   :  { %506 = vmatpush3.msra.mxu1 %v98_v11  ;;  %536 = vmatprep.subr.mxu0 %v709_v0 }
  0x50   :  { %507 = vmatprep.subr.mxu1 %v709_v0  ;;  %537 = vmatpush3.msra.mxu0 %v270_v25 }
  0x51   :  { %508 = vmatpush3.msra.mxu1 %v97_v12  ;;  %538 = vmatprep.subr.mxu0 %v709_v0 }
  0x52   :  { %509 = vmatprep.subr.mxu1 %v709_v0  ;;  %539 = vmatpush3.msra.mxu0 %v269_v26 }
  0x53   :  { %510 = vmatpush3.msra.mxu1 %v96_v13  ;;  %540 = vmatprep.subr.mxu0 %v709_v0 }
  0x54   :  { %511 = vmatprep.subr.mxu1 %v709_v0  ;;  %541 = vmatpush3.msra.mxu0 %v268_v27 }
  0x55   :  { %512 = vmatpush3.msra.mxu1 %v95_v14  ;;  %542 = vmatprep.subr.mxu0 %v709_v0 }
  0x56   :  { %513 = vmatprep.subr.mxu1 %v709_v0  ;;  %543 = vmatpush3.msra.mxu0 %v267_v28 }
  0x57   :  { %514 = vmatpush3.msra.mxu1 %v94_v15  ;;  %544 = vmatprep.subr.mxu0 %v709_v0 }
  0x58   :  { %515 = vmatprep.subr.mxu1 %v709_v0  ;;  %545 = vmatpush3.msra.mxu0 %v266_v29 }
  0x59   :  { %516 = vmatpush3.msra.mxu1 %v93_v16  ;;  %546 = vmatprep.subr.mxu0 %v709_v0 }
  0x5a   :  { %517 = vmatprep.subr.mxu1 %v709_v0  ;;  %547 = vmatpush3.msra.mxu0 %v265_v30 }
  0x5b   :  { %518 = vmatpush3.msra.mxu1 %v92_v17  ;;  %548 = vmatprep.subr.mxu0 %v709_v0 }
  0x5c   :  { %519 = vmatprep.subr.mxu1 %v709_v0  ;;  %549 = vmatpush3.msra.mxu0 %v264_v33 }
  0x5d   :  { %520 = vmatpush3.msra.mxu1 %v91_v18  ;;  %550 = vmatprep.subr.mxu0 %v709_v0 }
  0x5e   :  { %559 = vmatprep.subr.mxu1 %v709_v0  ;;  %551 = vmatpush3.msra.mxu0 %v263_v34 }
  0x5f   :  { %552 = vmatprep.subr.mxu0 %v709_v0 }
  0x60   :  { %553 = vmatpush3.msra.mxu0 %v262_v35 }
  0x61   :  { %554 = vmatprep.subr.mxu0 %v709_v0 }
  0x62   :  { %555 = vmatpush3.msra.mxu0 %v261_v36 }
 0x100   :  { %v177_v31 = vpop.f32.mrf.mxu0 }
 0x101   :  { %522 = vmatmul.mubr.f32.vlgmr.msra.gmra.mxu1 %v177_v31 }
 0x102   :  { %v488_v32 = vpop.f32.mrf.mxu0  ;;  %561 = vmatprep.mubr.msk.f32.mxu1 %vm710_vm0, %v709_v0 }
 0x1c1   :  { %v254_v38 = vpop.f32.mrf.mxu1 }
 0x1c2   :  { %v255_v39 = vadd.f32 %v443_v37, %v254_v38 }
 0x1c3   :  { %v523_v41 = vpop.f32.mrf.mxu1 }
 0x1c4   :  { %v258_v42 = vmax.f32 %v255_v39, 0.0 }
 0x1c6   :  { %v260_v43 = vmul.f32 %v259_v40, %v258_v42 }
 0x1c8   :  { %557 = vmatmul.mubr.f32.vlgmr.msra.gmra.mxu0 %v260_v43 }
 0x288   :  { %v343_v44 = vpop.f32.mrf.mxu0 }
 0x289   :  { %560 = vmatpush3.msra.mxu1 %v343_v44 }
 0x28a   :  { %v558_v45 = vpop.f32.mrf.mxu0  ;;  %562 = vmatmul.mubr.msk.f32.vlgmr.msra.gmra.mxu1 %vm107_vm1, %v773_v2 }
 0x34a   :  { %v420_v47 = vpop.f32.mrf.mxu1 }
 0x34b   :  { %v421_v48 = vadd.f32 %v444_v46, %v420_v47 }
 0x34c   :  { %v563_v49 = vpop.f32.mrf.mxu1 }
 0x34d   :  { %424 = vst [vmem:[#allocation11] sm:$0xff] %v421_v48 }
 0x34e   :  { %685 = shalt.err (!%p682_p1)
}
 0x34f   :  { %434 = dma.vmem_to_hbm [thread:$0]  %s432_s28, 128, %s831_s7, [#allocation4]  }
 0x350   :  { %700 = dma.done.wait [#allocation4], 128  }
 0x351   :  { %701 = vsyncadd [#allocation4], 4294967168 }
 0x352   :  { %438 = vsyncpa [#allocation3], 1 }
 0x353   :  { %439 = vsyncpa [#allocation6], 1 }
 0x354   :  { %440 = vsyncpa [#allocation9], 1 }
 0x355   :  { %441 = vsyncpa [#allocation4], 1 }

</bundles_post_ra>
